<compile_context>
chip_gen: v7x
topology: tpu7x:2x2x1
jax: 0.10.0
libtpu: 0.0.40
codegen_flags: <defaults>
</compile_context>

<pallas_src>
import functools

import jax
import jax.numpy as jnp
from jax.experimental import pallas as pl
from jax.experimental.pallas import tpu as pltpu

_VMEM_LIMIT = 32 * 1024 * 1024  # explicit scoped-VMEM budget (v5e default is 16 MiB)


def _largest_divisor(n, cap):
    for d in range(min(n, cap), 0, -1):
        if n % d == 0:
            return d
    return 1


def _pick_block(T, cap, row_mult=1):
    """Largest divisor of T <= cap, preferring sublane-aligned flat row counts."""
    divs = [d for d in range(1, min(T, cap) + 1) if T % d == 0]
    aligned = [d for d in divs if (d * row_mult) % 8 == 0 or d == T]
    return max(aligned) if aligned else max(divs)


def _vmem_spec():
    # Full-array VMEM residency for grid-invariant weights / biases.
    return pl.BlockSpec(memory_space=pltpu.MemorySpace.VMEM)


def _cparams(sem):
    return pltpu.CompilerParams(dimension_semantics=sem,
                                vmem_limit_bytes=_VMEM_LIMIT)


# ----------------------------------------------------------------------------
# Layer-0 projection: linear1 + ReLU + per-gate input projections for both
# directions.  Gate-major output (3, T, B, H): plane g holds gate g (r, z, n)
# with b_ih (and b_hh for r/z) already added.
# ----------------------------------------------------------------------------
def _proj_l0_kernel(x_ref, w1T_ref, b1_ref, wfT_ref, wbT_ref, pbf_ref, pbb_ref,
                    gf_ref, gb_ref, *, block_t, B):
    H = w1T_ref.shape[1]
    w_dt = w1T_ref.dtype
    h = jnp.dot(x_ref[...].astype(w_dt), w1T_ref[...],
                preferred_element_type=jnp.float32)
    h = jnp.maximum(h + b1_ref[...].astype(jnp.float32), 0.0)
    hc = h.astype(w_dt)
    for g in range(3):  # r, z, n — per-gate gemms keep everything lane-dense
        pf = (jnp.dot(hc, wfT_ref[g], preferred_element_type=jnp.float32)
              + pbf_ref[g].astype(jnp.float32))
        pb = (jnp.dot(hc, wbT_ref[g], preferred_element_type=jnp.float32)
              + pbb_ref[g].astype(jnp.float32))
        # TODO(synk): this reshape relayouts when B % 8 != 0; keep batch a
        #             multiple of 8 in production so it is free.
        gf_ref[g] = pf.reshape(block_t, B, H).astype(gf_ref.dtype)
        gb_ref[g] = pb.reshape(block_t, B, H).astype(gb_ref.dtype)


def proj_layer0(x_flat, w1T, b1, wihT_f, wihT_b, pbf, pbb, T, B, block_t,
                act_dtype):
    Din = x_flat.shape[1]
    H = w1T.shape[1]
    nT = T // block_t
    kern = functools.partial(_proj_l0_kernel, block_t=block_t, B=B)
    return pl.pallas_call(
        kern,
        out_shape=(jax.ShapeDtypeStruct((3, T, B, H), act_dtype),
                   jax.ShapeDtypeStruct((3, T, B, H), act_dtype)),
        grid=(nT,),
        in_specs=[
            pl.BlockSpec((block_t * B, Din), lambda i: (i, 0)),
            _vmem_spec(), _vmem_spec(), _vmem_spec(), _vmem_spec(),
            _vmem_spec(), _vmem_spec(),
        ],
        out_specs=(
            pl.BlockSpec((3, block_t, B, H), lambda i: (0, i, 0, 0)),
            pl.BlockSpec((3, block_t, B, H), lambda i: (0, i, 0, 0)),
        ),
        compiler_params=_cparams(("parallel",)),
    )(x_flat, w1T, b1, wihT_f, wihT_b, pbf, pbb)


# ----------------------------------------------------------------------------
# Layer-l (l>=1) projection: consumes the previous layer's fwd/bwd halves; the
# direction concat is absorbed into split per-gate weights:
#   gi[g] = hf @ w_top[g] + hb @ w_bot[g] + bias[g]
# ----------------------------------------------------------------------------
def _proj_split_kernel(hf_ref, hb_ref, wft_ref, wfb_ref, wbt_ref, wbb_ref,
                       pbf_ref, pbb_ref, gf_ref, gb_ref, *, block_t, B):
    H = hf_ref.shape[-1]
    w_dt = wft_ref.dtype
    hf2 = hf_ref[...].reshape(block_t * B, H).astype(w_dt)
    hb2 = hb_ref[...].reshape(block_t * B, H).astype(w_dt)
    for g in range(3):
        pf = (jnp.dot(hf2, wft_ref[g], preferred_element_type=jnp.float32)
              + jnp.dot(hb2, wfb_ref[g], preferred_element_type=jnp.float32)
              + pbf_ref[g].astype(jnp.float32))
        pb = (jnp.dot(hf2, wbt_ref[g], preferred_element_type=jnp.float32)
              + jnp.dot(hb2, wbb_ref[g], preferred_element_type=jnp.float32)
              + pbb_ref[g].astype(jnp.float32))
        gf_ref[g] = pf.reshape(block_t, B, H).astype(gf_ref.dtype)
        gb_ref[g] = pb.reshape(block_t, B, H).astype(gb_ref.dtype)


def proj_split(hf, hb, wf_top, wf_bot, wb_top, wb_bot, pbf, pbb, block_t,
               act_dtype):
    T, B, H = hf.shape
    nT = T // block_t
    kern = functools.partial(_proj_split_kernel, block_t=block_t, B=B)
    return pl.pallas_call(
        kern,
        out_shape=(jax.ShapeDtypeStruct((3, T, B, H), act_dtype),
                   jax.ShapeDtypeStruct((3, T, B, H), act_dtype)),
        grid=(nT,),
        in_specs=[
            pl.BlockSpec((block_t, B, H), lambda i: (i, 0, 0)),
            pl.BlockSpec((block_t, B, H), lambda i: (i, 0, 0)),
            _vmem_spec(), _vmem_spec(), _vmem_spec(), _vmem_spec(),
            _vmem_spec(), _vmem_spec(),
        ],
        out_specs=(
            pl.BlockSpec((3, block_t, B, H), lambda i: (0, i, 0, 0)),
            pl.BlockSpec((3, block_t, B, H), lambda i: (0, i, 0, 0)),
        ),
        compiler_params=_cparams(("parallel",)),
    )(hf, hb, wf_top, wf_bot, wb_top, wb_bot, pbf, pbb)


# ----------------------------------------------------------------------------
# Fused bidirectional GRU recurrence.  Grid = sequential time blocks.  Hidden
# state is carried in the fori_loop carry (vregs); VMEM scratch only persists
# it across grid steps (one write per block).  Per step: 3 per-gate (B,H)x(H,H)
# matmuls per direction + f32 cell math; no lane-dim slicing anywhere.
# ----------------------------------------------------------------------------
def _bigru_kernel(gf_ref, gb_ref, whf_ref, whb_ref, bhnf_ref, bhnb_ref,
                  of_ref, ob_ref, hf_scr, hb_scr, *, block_t, unroll):
    B, H = hf_scr.shape

    @pl.when(pl.program_id(0) == 0)
    def _():
        hf_scr[...] = jnp.zeros_like(hf_scr)
        hb_scr[...] = jnp.zeros_like(hb_scr)

    w_dt = whf_ref.dtype
    whf_r, whf_z, whf_n = whf_ref[0], whf_ref[1], whf_ref[2]
    whb_r, whb_z, whb_n = whb_ref[0], whb_ref[1], whb_ref[2]
    # Hoisted bias broadcasts (JAX does not CSE broadcast_in_dim inside the
    # unrolled loop).  Only b_hn survives here; b_hr/b_hz were folded into gi.
    bhn_f = jnp.broadcast_to(bhnf_ref[...].astype(jnp.float32), (B, H))
    bhn_b = jnp.broadcast_to(bhnb_ref[...].astype(jnp.float32), (B, H))

    def cell(g_r, g_z, g_n, gh_r, gh_z, gh_n, h_prev):
        r = jax.nn.sigmoid(g_r + gh_r)
        z = jax.nn.sigmoid(g_z + gh_z)
        n = jnp.tanh(g_n + r * gh_n)          # b_hn stays inside r*(...)
        return (1.0 - z) * n + z * h_prev

    def step(k, carry):
        hf, hb = carry                         # hidden carried in vregs
        # forward direction: local timestep k
        hf_c = hf.astype(w_dt)
        ghf_r = jnp.dot(hf_c, whf_r, preferred_element_type=jnp.float32)
        ghf_z = jnp.dot(hf_c, whf_z, preferred_element_type=jnp.float32)
        ghf_n = jnp.dot(hf_c, whf_n, preferred_element_type=jnp.float32) + bhn_f
        hf_new = cell(gf_ref[0, k].astype(jnp.float32),
                      gf_ref[1, k].astype(jnp.float32),
                      gf_ref[2, k].astype(jnp.float32),
                      ghf_r, ghf_z, ghf_n, hf)
        of_ref[k] = hf_new.astype(of_ref.dtype)

        # backward direction: mirrored local timestep in the reversed block
        kb = block_t - 1 - k
        hb_c = hb.astype(w_dt)
        ghb_r = jnp.dot(hb_c, whb_r, preferred_element_type=jnp.float32)
        ghb_z = jnp.dot(hb_c, whb_z, preferred_element_type=jnp.float32)
        ghb_n = jnp.dot(hb_c, whb_n, preferred_element_type=jnp.float32) + bhn_b
        hb_new = cell(gb_ref[0, kb].astype(jnp.float32),
                      gb_ref[1, kb].astype(jnp.float32),
                      gb_ref[2, kb].astype(jnp.float32),
                      ghb_r, ghb_z, ghb_n, hb)
        ob_ref[kb] = hb_new.astype(ob_ref.dtype)
        return hf_new, hb_new

    hf_fin, hb_fin = jax.lax.fori_loop(
        0, block_t, step, (hf_scr[...], hb_scr[...]), unroll=unroll)
    # One scratch write per grid step (persists state across time blocks).
    hf_scr[...] = hf_fin
    hb_scr[...] = hb_fin


def bigru_layer(gf, gb, whhT_f, whhT_b, bhn_f, bhn_b, n_hidden, block_t,
                act_dtype, unroll=True):
    _, T, B, H = gf.shape
    nT = T // block_t
    kern = functools.partial(_bigru_kernel, block_t=block_t, unroll=unroll)
    return pl.pallas_call(
        kern,
        out_shape=(jax.ShapeDtypeStruct((T, B, H), act_dtype),
                   jax.ShapeDtypeStruct((T, B, H), act_dtype)),
        grid=(nT,),
        in_specs=[
            pl.BlockSpec((3, block_t, B, H), lambda i: (0, i, 0, 0)),
            pl.BlockSpec((3, block_t, B, H), lambda i: (0, nT - 1 - i, 0, 0)),
            _vmem_spec(), _vmem_spec(), _vmem_spec(), _vmem_spec(),
        ],
        out_specs=(
            pl.BlockSpec((block_t, B, H), lambda i: (i, 0, 0)),
            pl.BlockSpec((block_t, B, H), lambda i: (nT - 1 - i, 0, 0)),
        ),
        scratch_shapes=[pltpu.VMEM((B, H), jnp.float32),
                        pltpu.VMEM((B, H), jnp.float32)],
        compiler_params=_cparams(("arbitrary",)),
    )(gf, gb, whhT_f, whhT_b, bhn_f, bhn_b)


# ----------------------------------------------------------------------------
# Head: linear2 over the (still split) fwd/bwd halves, flat-row output.
#   y = hf @ w2T[:H] + hb @ w2T[H:] + b2
# ----------------------------------------------------------------------------
def _head_kernel(hf_ref, hb_ref, w_top_ref, w_bot_ref, b_ref, o_ref,
                 *, block_t, B):
    H = hf_ref.shape[-1]
    w_dt = w_top_ref.dtype
    hf2 = hf_ref[...].reshape(block_t * B, H).astype(w_dt)
    hb2 = hb_ref[...].reshape(block_t * B, H).astype(w_dt)
    y = (jnp.dot(hf2, w_top_ref[...], preferred_element_type=jnp.float32)
         + jnp.dot(hb2, w_bot_ref[...], preferred_element_type=jnp.float32)
         + b_ref[...].astype(jnp.float32))
    o_ref[...] = y.astype(o_ref.dtype)


def head_linear(hf, hb, w_top, w_bot, b2, block_t):
    T, B, H = hf.shape
    N = w_top.shape[1]
    nT = T // block_t
    kern = functools.partial(_head_kernel, block_t=block_t, B=B)
    return pl.pallas_call(
        kern,
        out_shape=jax.ShapeDtypeStruct((T * B, N), jnp.float32),
        grid=(nT,),
        in_specs=[
            pl.BlockSpec((block_t, B, H), lambda i: (i, 0, 0)),
            pl.BlockSpec((block_t, B, H), lambda i: (i, 0, 0)),
            _vmem_spec(), _vmem_spec(), _vmem_spec(),
        ],
        out_specs=pl.BlockSpec((block_t * B, N), lambda i: (i, 0)),
        compiler_params=_cparams(("parallel",)),
    )(hf, hb, w_top, w_bot, b2)


# ----------------------------------------------------------------------------
# Full forward pass
# ----------------------------------------------------------------------------
def rnn_forward(x, params, n_hidden, n_layers=2, rec_block_cap=32,
                proj_block_cap=128, act_dtype=jnp.float32):
    B, T, n_input = x.shape
    H = n_hidden
    bt_rec = _largest_divisor(T, rec_block_cap)
    bt_proj = _pick_block(T, proj_block_cap, row_mult=B)

    # Only the (small) module input is transposed; all hidden activations stay
    # time-major end-to-end.  Layer-0 gemm input uses flat rows (T*B, n_input).
    x_flat = jnp.transpose(x, (1, 0, 2)).reshape(T * B, n_input)

    def fold_bias(l, tag):
        bih = params[f"bih_l{l}_{tag}"]
        bhh = params[f"bhh_l{l}_{tag}"]
        # Fold b_hr / b_hz into the precomputed projections; b_hn must stay in
        # the recurrence (inside r*(...)) to match PyTorch GRU semantics.
        pb = jnp.concatenate([bih[:2] + bhh[:2], bih[2:3]], axis=0)
        return pb, bhh[2]

    pbf, bhn_f = fold_bias(0, "f")
    pbb, bhn_b = fold_bias(0, "b")
    gf, gb = proj_layer0(x_flat, params["w1T"], params["b1"],
                         params["wihT_l0_f"], params["wihT_l0_b"],
                         pbf, pbb, T, B, bt_proj, act_dtype)
    hf, hb = bigru_layer(gf, gb, params["whhT_l0_f"], params["whhT_l0_b"],
                         bhn_f, bhn_b, H, bt_rec, act_dtype)

    for l in range(1, n_layers):
        pbf, bhn_f = fold_bias(l, "f")
        pbb, bhn_b = fold_bias(l, "b")
        wf = params[f"wihT_l{l}_f"]   # (3, 2H, H)
        wb = params[f"wihT_l{l}_b"]
        gf, gb = proj_split(hf, hb, wf[:, :H], wf[:, H:], wb[:, :H], wb[:, H:],
                            pbf, pbb, bt_proj, act_dtype)
        hf, hb = bigru_layer(gf, gb, params[f"whhT_l{l}_f"],
                             params[f"whhT_l{l}_b"], bhn_f, bhn_b,
                             H, bt_rec, act_dtype)

    w2 = params["w2T"]                # (2H, n_output)
    y_flat = head_linear(hf, hb, w2[:H], w2[H:], params["b2"], bt_proj)
    n_output = w2.shape[1]
    return jnp.transpose(y_flat.reshape(T, B, n_output), (1, 0, 2))


# ----------------------------------------------------------------------------
# Pure-JAX reference (for correctness check)
# ----------------------------------------------------------------------------
def _ref_gru_dir(x_tbd, wihT, whhT, bih, bhh, reverse):
    T, B, _ = x_tbd.shape
    H = whhT.shape[-1]
    xs = x_tbd[::-1] if reverse else x_tbd

    def step(h, x_t):
        r = jax.nn.sigmoid(x_t @ wihT[0] + bih[0] + h @ whhT[0] + bhh[0])
        z = jax.nn.sigmoid(x_t @ wihT[1] + bih[1] + h @ whhT[1] + bhh[1])
        n = jnp.tanh(x_t @ wihT[2] + bih[2] + r * (h @ whhT[2] + bhh[2]))
        h_new = (1.0 - z) * n + z * h
        return h_new, h_new

    _, ys = jax.lax.scan(step, jnp.zeros((B, H), jnp.float32), xs)
    return ys[::-1] if reverse else ys


def ref_forward(x, params, n_hidden, n_layers=2):
    B, T, n_input = x.shape
    h = jnp.maximum(x.reshape(B * T, n_input) @ params["w1T"] + params["b1"], 0.0)
    xt = jnp.transpose(h.reshape(B, T, n_hidden), (1, 0, 2))
    for l in range(n_layers):
        fwd = _ref_gru_dir(xt, params[f"wihT_l{l}_f"], params[f"whhT_l{l}_f"],
                           params[f"bih_l{l}_f"], params[f"bhh_l{l}_f"], False)
        bwd = _ref_gru_dir(xt, params[f"wihT_l{l}_b"], params[f"whhT_l{l}_b"],
                           params[f"bih_l{l}_b"], params[f"bhh_l{l}_b"], True)
        xt = jnp.concatenate([fwd, bwd], axis=-1)
    y = jnp.transpose(xt, (1, 0, 2)).reshape(B * T, 2 * n_hidden)
    n_output = params["w2T"].shape[1]
    return (y @ params["w2T"] + params["b2"]).reshape(B, T, n_output)


# ----------------------------------------------------------------------------
# Deterministic parameter init (PyTorch-style uniform fan-in bounds).
# GRU weights are stored gate-major: (3, Din, H) / (3, H, H), gate order r,z,n.
# ----------------------------------------------------------------------------
def init_params(key, n_input, n_output, n_hidden, n_layers=2):
    params = {}
    keys = iter(jax.random.split(key, 64))

    def uni(shape, bound):
        return jax.random.uniform(next(keys), shape, jnp.float32, -bound, bound)

    b_lin1 = 1.0 / (n_input ** 0.5)
    params["w1T"] = uni((n_input, n_hidden), b_lin1)          # linear1 weight^T
    params["b1"] = uni((1, n_hidden), b_lin1)

    b_gru = 1.0 / (n_hidden ** 0.5)
    for l in range(n_layers):
        d_in = n_hidden if l == 0 else 2 * n_hidden
        for tag in ("f", "b"):  # forward / backward direction
            params[f"wihT_l{l}_{tag}"] = uni((3, d_in, n_hidden), b_gru)
            params[f"whhT_l{l}_{tag}"] = uni((3, n_hidden, n_hidden), b_gru)
            params[f"bih_l{l}_{tag}"] = uni((3, 1, n_hidden), b_gru)
            params[f"bhh_l{l}_{tag}"] = uni((3, 1, n_hidden), b_gru)

    b_lin2 = 1.0 / ((2 * n_hidden) ** 0.5)
    params["w2T"] = uni((2 * n_hidden, n_output), b_lin2)     # linear2 weight^T
    params["b2"] = uni((1, n_output), b_lin2)
    return params


if __name__ == "__main__":
    n_input, n_output, n_hidden = 16, 8, 32
    B, T = 2, 8

    key = jax.random.PRNGKey(0)
    kx, kp = jax.random.split(key)
    x = jax.random.normal(kx, (B, T, n_input), jnp.float32)
    params = init_params(kp, n_input, n_output, n_hidden)

    ref = jax.block_until_ready(ref_forward(x, params, n_hidden))

    # f32 storage path: tight check.
    out = jax.block_until_ready(rnn_forward(x, params, n_hidden))
    assert out.shape == (B, T, n_output), out.shape
    err_f32 = float(jnp.max(jnp.abs(out - ref)))

    # bf16 storage path: weights + inter-kernel activations in bf16,
    # f32 accumulation and f32 cell math (v5e-safe); looser check.
    params_bf16 = {k: (v.astype(jnp.bfloat16) if k.startswith("w") else v)
                   for k, v in params.items()}
    out_bf16 = jax.block_until_ready(
        rnn_forward(x, params_bf16, n_hidden, act_dtype=jnp.bfloat16))
    err_bf16 = float(jnp.max(jnp.abs(out_bf16 - ref)))

    if err_f32 < 1e-4 and err_bf16 < 5e-2:
        print("KERNEL_OK")
    else:
        print(f"MISMATCH err_f32={err_f32} err_bf16={err_bf16}")
</pallas_src>

<mosaic_0001>
module attributes {stable_mosaic.version = 11 : i64} {
  func.func @_proj_l0_kernel(%arg0: i32, %arg1: memref<16x16xf32, #tpu.memory_space<vmem>>, %arg2: memref<16x32xf32, #tpu.memory_space<vmem>>, %arg3: memref<1x32xf32, #tpu.memory_space<vmem>>, %arg4: memref<3x32x32xf32, #tpu.memory_space<vmem>>, %arg5: memref<3x32x32xf32, #tpu.memory_space<vmem>>, %arg6: memref<3x1x32xf32, #tpu.memory_space<vmem>>, %arg7: memref<3x1x32xf32, #tpu.memory_space<vmem>>, %arg8: memref<3x8x2x32xf32, #tpu.memory_space<vmem>>, %arg9: memref<3x8x2x32xf32, #tpu.memory_space<vmem>>) attributes {dimension_semantics = [#tpu.dimension_semantics<parallel>], iteration_bounds = array<i64: 1>, scalar_prefetch = 0 : i64, scratch_operands = 0 : i64, tpu.core_type = #tpu.core_type<tc>, window_params = [{transform_indices = @transform_0, window_bounds = array<i64: 16, 16>}, {pipeline_mode = #tpu.pipeline_mode<synchronous>, transform_indices = @transform_1, window_bounds = array<i64: 16, 32>}, {pipeline_mode = #tpu.pipeline_mode<synchronous>, transform_indices = @transform_2, window_bounds = array<i64: 1, 32>}, {pipeline_mode = #tpu.pipeline_mode<synchronous>, transform_indices = @transform_3, window_bounds = array<i64: 3, 32, 32>}, {pipeline_mode = #tpu.pipeline_mode<synchronous>, transform_indices = @transform_4, window_bounds = array<i64: 3, 32, 32>}, {pipeline_mode = #tpu.pipeline_mode<synchronous>, transform_indices = @transform_5, window_bounds = array<i64: 3, 1, 32>}, {pipeline_mode = #tpu.pipeline_mode<synchronous>, transform_indices = @transform_6, window_bounds = array<i64: 3, 1, 32>}, {transform_indices = @transform_7, window_bounds = array<i64: 3, 8, 2, 32>}, {transform_indices = @transform_8, window_bounds = array<i64: 3, 8, 2, 32>}]} {
    %c0 = arith.constant 0 : index
    %c0_0 = arith.constant 0 : index
    %0 = vector.load %arg1[%c0, %c0_0] : memref<16x16xf32, #tpu.memory_space<vmem>>, vector<16x16xf32>
    %c0_1 = arith.constant 0 : index
    %c0_2 = arith.constant 0 : index
    %1 = vector.load %arg2[%c0_1, %c0_2] : memref<16x32xf32, #tpu.memory_space<vmem>>, vector<16x32xf32>
    %cst = arith.constant dense<0.000000e+00> : vector<16x32xf32>
    %2 = tpu.matmul %0, %1, %cst {dimension_numbers = #tpu.dot_dimension_numbers<[1], [0], [0], [1], [0, 0, 1, 1], [], []>} : vector<16x16xf32>, vector<16x32xf32>, vector<16x32xf32> -> vector<16x32xf32>
    %c0_3 = arith.constant 0 : index
    %c0_4 = arith.constant 0 : index
    %3 = vector.load %arg3[%c0_3, %c0_4] : memref<1x32xf32, #tpu.memory_space<vmem>>, vector<1x32xf32>
    %4 = vector.broadcast %3 : vector<1x32xf32> to vector<16x32xf32>
    %5 = arith.addf %2, %4 : vector<16x32xf32>
    %cst_5 = arith.constant 0.000000e+00 : f32
    %6 = vector.broadcast %cst_5 : f32 to vector<16x32xf32>
    %7 = arith.maximumf %5, %6 : vector<16x32xf32>
    %c0_6 = arith.constant 0 : index
    %c0_7 = arith.constant 0 : index
    %c0_8 = arith.constant 0 : index
    %8 = vector.load %arg4[%c0_6, %c0_7, %c0_8] : memref<3x32x32xf32, #tpu.memory_space<vmem>>, vector<1x32x32xf32>
    %9 = vector.shape_cast %8 : vector<1x32x32xf32> to vector<32x32xf32>
    %cst_9 = arith.constant dense<0.000000e+00> : vector<16x32xf32>
    %10 = tpu.matmul %7, %9, %cst_9 {dimension_numbers = #tpu.dot_dimension_numbers<[1], [0], [0], [1], [0, 0, 1, 1], [], []>} : vector<16x32xf32>, vector<32x32xf32>, vector<16x32xf32> -> vector<16x32xf32>
    %c0_10 = arith.constant 0 : index
    %c0_11 = arith.constant 0 : index
    %c0_12 = arith.constant 0 : index
    %11 = vector.load %arg6[%c0_10, %c0_11, %c0_12] : memref<3x1x32xf32, #tpu.memory_space<vmem>>, vector<1x1x32xf32>
    %12 = vector.shape_cast %11 : vector<1x1x32xf32> to vector<1x32xf32>
    %13 = vector.broadcast %12 : vector<1x32xf32> to vector<16x32xf32>
    %14 = arith.addf %10, %13 : vector<16x32xf32>
    %c0_13 = arith.constant 0 : index
    %c0_14 = arith.constant 0 : index
    %c0_15 = arith.constant 0 : index
    %15 = vector.load %arg5[%c0_13, %c0_14, %c0_15] : memref<3x32x32xf32, #tpu.memory_space<vmem>>, vector<1x32x32xf32>
    %16 = vector.shape_cast %15 : vector<1x32x32xf32> to vector<32x32xf32>
    %cst_16 = arith.constant dense<0.000000e+00> : vector<16x32xf32>
    %17 = tpu.matmul %7, %16, %cst_16 {dimension_numbers = #tpu.dot_dimension_numbers<[1], [0], [0], [1], [0, 0, 1, 1], [], []>} : vector<16x32xf32>, vector<32x32xf32>, vector<16x32xf32> -> vector<16x32xf32>
    %c0_17 = arith.constant 0 : index
    %c0_18 = arith.constant 0 : index
    %c0_19 = arith.constant 0 : index
    %18 = vector.load %arg7[%c0_17, %c0_18, %c0_19] : memref<3x1x32xf32, #tpu.memory_space<vmem>>, vector<1x1x32xf32>
    %19 = vector.shape_cast %18 : vector<1x1x32xf32> to vector<1x32xf32>
    %20 = vector.broadcast %19 : vector<1x32xf32> to vector<16x32xf32>
    %21 = arith.addf %17, %20 : vector<16x32xf32>
    %22 = vector.shape_cast %14 : vector<16x32xf32> to vector<8x2x32xf32>
    %c0_20 = arith.constant 0 : index
    %c0_21 = arith.constant 0 : index
    %c0_22 = arith.constant 0 : index
    %c0_23 = arith.constant 0 : index
    %23 = vector.load %arg8[%c0_20, %c0_21, %c0_22, %c0_23] : memref<3x8x2x32xf32, #tpu.memory_space<vmem>>, vector<1x8x2x32xf32>
    %24 = vector.shape_cast %23 : vector<1x8x2x32xf32> to vector<8x2x32xf32>
    %25 = vector.shape_cast %22 : vector<8x2x32xf32> to vector<1x8x2x32xf32>
    tpu.vector_store %arg8[%c0_20, %c0_21, %c0_22, %c0_23], %25 {strides = array<i32>} : memref<3x8x2x32xf32, #tpu.memory_space<vmem>>, vector<1x8x2x32xf32>,
    %26 = vector.shape_cast %21 : vector<16x32xf32> to vector<8x2x32xf32>
    %c0_24 = arith.constant 0 : index
    %c0_25 = arith.constant 0 : index
    %c0_26 = arith.constant 0 : index
    %c0_27 = arith.constant 0 : index
    %27 = vector.load %arg9[%c0_24, %c0_25, %c0_26, %c0_27] : memref<3x8x2x32xf32, #tpu.memory_space<vmem>>, vector<1x8x2x32xf32>
    %28 = vector.shape_cast %27 : vector<1x8x2x32xf32> to vector<8x2x32xf32>
    %29 = vector.shape_cast %26 : vector<8x2x32xf32> to vector<1x8x2x32xf32>
    tpu.vector_store %arg9[%c0_24, %c0_25, %c0_26, %c0_27], %29 {strides = array<i32>} : memref<3x8x2x32xf32, #tpu.memory_space<vmem>>, vector<1x8x2x32xf32>,
    %c1 = arith.constant 1 : index
    %c0_28 = arith.constant 0 : index
    %c0_29 = arith.constant 0 : index
    %30 = vector.load %arg4[%c1, %c0_28, %c0_29] : memref<3x32x32xf32, #tpu.memory_space<vmem>>, vector<1x32x32xf32>
    %31 = vector.shape_cast %30 : vector<1x32x32xf32> to vector<32x32xf32>
    %cst_30 = arith.constant dense<0.000000e+00> : vector<16x32xf32>
    %32 = tpu.matmul %7, %31, %cst_30 {dimension_numbers = #tpu.dot_dimension_numbers<[1], [0], [0], [1], [0, 0, 1, 1], [], []>} : vector<16x32xf32>, vector<32x32xf32>, vector<16x32xf32> -> vector<16x32xf32>
    %c1_31 = arith.constant 1 : index
    %c0_32 = arith.constant 0 : index
    %c0_33 = arith.constant 0 : index
    %33 = vector.load %arg6[%c1_31, %c0_32, %c0_33] : memref<3x1x32xf32, #tpu.memory_space<vmem>>, vector<1x1x32xf32>
    %34 = vector.shape_cast %33 : vector<1x1x32xf32> to vector<1x32xf32>
    %35 = vector.broadcast %34 : vector<1x32xf32> to vector<16x32xf32>
    %36 = arith.addf %32, %35 : vector<16x32xf32>
    %c1_34 = arith.constant 1 : index
    %c0_35 = arith.constant 0 : index
    %c0_36 = arith.constant 0 : index
    %37 = vector.load %arg5[%c1_34, %c0_35, %c0_36] : memref<3x32x32xf32, #tpu.memory_space<vmem>>, vector<1x32x32xf32>
    %38 = vector.shape_cast %37 : vector<1x32x32xf32> to vector<32x32xf32>
    %cst_37 = arith.constant dense<0.000000e+00> : vector<16x32xf32>
    %39 = tpu.matmul %7, %38, %cst_37 {dimension_numbers = #tpu.dot_dimension_numbers<[1], [0], [0], [1], [0, 0, 1, 1], [], []>} : vector<16x32xf32>, vector<32x32xf32>, vector<16x32xf32> -> vector<16x32xf32>
    %c1_38 = arith.constant 1 : index
    %c0_39 = arith.constant 0 : index
    %c0_40 = arith.constant 0 : index
    %40 = vector.load %arg7[%c1_38, %c0_39, %c0_40] : memref<3x1x32xf32, #tpu.memory_space<vmem>>, vector<1x1x32xf32>
    %41 = vector.shape_cast %40 : vector<1x1x32xf32> to vector<1x32xf32>
    %42 = vector.broadcast %41 : vector<1x32xf32> to vector<16x32xf32>
    %43 = arith.addf %39, %42 : vector<16x32xf32>
    %44 = vector.shape_cast %36 : vector<16x32xf32> to vector<8x2x32xf32>
    %c1_41 = arith.constant 1 : index
    %c0_42 = arith.constant 0 : index
    %c0_43 = arith.constant 0 : index
    %c0_44 = arith.constant 0 : index
    %45 = vector.load %arg8[%c1_41, %c0_42, %c0_43, %c0_44] : memref<3x8x2x32xf32, #tpu.memory_space<vmem>>, vector<1x8x2x32xf32>
    %46 = vector.shape_cast %45 : vector<1x8x2x32xf32> to vector<8x2x32xf32>
    %47 = vector.shape_cast %44 : vector<8x2x32xf32> to vector<1x8x2x32xf32>
    tpu.vector_store %arg8[%c1_41, %c0_42, %c0_43, %c0_44], %47 {strides = array<i32>} : memref<3x8x2x32xf32, #tpu.memory_space<vmem>>, vector<1x8x2x32xf32>,
    %48 = vector.shape_cast %43 : vector<16x32xf32> to vector<8x2x32xf32>
    %c1_45 = arith.constant 1 : index
    %c0_46 = arith.constant 0 : index
    %c0_47 = arith.constant 0 : index
    %c0_48 = arith.constant 0 : index
    %49 = vector.load %arg9[%c1_45, %c0_46, %c0_47, %c0_48] : memref<3x8x2x32xf32, #tpu.memory_space<vmem>>, vector<1x8x2x32xf32>
    %50 = vector.shape_cast %49 : vector<1x8x2x32xf32> to vector<8x2x32xf32>
    %51 = vector.shape_cast %48 : vector<8x2x32xf32> to vector<1x8x2x32xf32>
    tpu.vector_store %arg9[%c1_45, %c0_46, %c0_47, %c0_48], %51 {strides = array<i32>} : memref<3x8x2x32xf32, #tpu.memory_space<vmem>>, vector<1x8x2x32xf32>,
    %c2 = arith.constant 2 : index
    %c0_49 = arith.constant 0 : index
    %c0_50 = arith.constant 0 : index
    %52 = vector.load %arg4[%c2, %c0_49, %c0_50] : memref<3x32x32xf32, #tpu.memory_space<vmem>>, vector<1x32x32xf32>
    %53 = vector.shape_cast %52 : vector<1x32x32xf32> to vector<32x32xf32>
    %cst_51 = arith.constant dense<0.000000e+00> : vector<16x32xf32>
    %54 = tpu.matmul %7, %53, %cst_51 {dimension_numbers = #tpu.dot_dimension_numbers<[1], [0], [0], [1], [0, 0, 1, 1], [], []>} : vector<16x32xf32>, vector<32x32xf32>, vector<16x32xf32> -> vector<16x32xf32>
    %c2_52 = arith.constant 2 : index
    %c0_53 = arith.constant 0 : index
    %c0_54 = arith.constant 0 : index
    %55 = vector.load %arg6[%c2_52, %c0_53, %c0_54] : memref<3x1x32xf32, #tpu.memory_space<vmem>>, vector<1x1x32xf32>
    %56 = vector.shape_cast %55 : vector<1x1x32xf32> to vector<1x32xf32>
    %57 = vector.broadcast %56 : vector<1x32xf32> to vector<16x32xf32>
    %58 = arith.addf %54, %57 : vector<16x32xf32>
    %c2_55 = arith.constant 2 : index
    %c0_56 = arith.constant 0 : index
    %c0_57 = arith.constant 0 : index
    %59 = vector.load %arg5[%c2_55, %c0_56, %c0_57] : memref<3x32x32xf32, #tpu.memory_space<vmem>>, vector<1x32x32xf32>
    %60 = vector.shape_cast %59 : vector<1x32x32xf32> to vector<32x32xf32>
    %cst_58 = arith.constant dense<0.000000e+00> : vector<16x32xf32>
    %61 = tpu.matmul %7, %60, %cst_58 {dimension_numbers = #tpu.dot_dimension_numbers<[1], [0], [0], [1], [0, 0, 1, 1], [], []>} : vector<16x32xf32>, vector<32x32xf32>, vector<16x32xf32> -> vector<16x32xf32>
    %c2_59 = arith.constant 2 : index
    %c0_60 = arith.constant 0 : index
    %c0_61 = arith.constant 0 : index
    %62 = vector.load %arg7[%c2_59, %c0_60, %c0_61] : memref<3x1x32xf32, #tpu.memory_space<vmem>>, vector<1x1x32xf32>
    %63 = vector.shape_cast %62 : vector<1x1x32xf32> to vector<1x32xf32>
    %64 = vector.broadcast %63 : vector<1x32xf32> to vector<16x32xf32>
    %65 = arith.addf %61, %64 : vector<16x32xf32>
    %66 = vector.shape_cast %58 : vector<16x32xf32> to vector<8x2x32xf32>
    %c2_62 = arith.constant 2 : index
    %c0_63 = arith.constant 0 : index
    %c0_64 = arith.constant 0 : index
    %c0_65 = arith.constant 0 : index
    %67 = vector.load %arg8[%c2_62, %c0_63, %c0_64, %c0_65] : memref<3x8x2x32xf32, #tpu.memory_space<vmem>>, vector<1x8x2x32xf32>
    %68 = vector.shape_cast %67 : vector<1x8x2x32xf32> to vector<8x2x32xf32>
    %69 = vector.shape_cast %66 : vector<8x2x32xf32> to vector<1x8x2x32xf32>
    tpu.vector_store %arg8[%c2_62, %c0_63, %c0_64, %c0_65], %69 {strides = array<i32>} : memref<3x8x2x32xf32, #tpu.memory_space<vmem>>, vector<1x8x2x32xf32>,
    %70 = vector.shape_cast %65 : vector<16x32xf32> to vector<8x2x32xf32>
    %c2_66 = arith.constant 2 : index
    %c0_67 = arith.constant 0 : index
    %c0_68 = arith.constant 0 : index
    %c0_69 = arith.constant 0 : index
    %71 = vector.load %arg9[%c2_66, %c0_67, %c0_68, %c0_69] : memref<3x8x2x32xf32, #tpu.memory_space<vmem>>, vector<1x8x2x32xf32>
    %72 = vector.shape_cast %71 : vector<1x8x2x32xf32> to vector<8x2x32xf32>
    %73 = vector.shape_cast %70 : vector<8x2x32xf32> to vector<1x8x2x32xf32>
    tpu.vector_store %arg9[%c2_66, %c0_67, %c0_68, %c0_69], %73 {strides = array<i32>} : memref<3x8x2x32xf32, #tpu.memory_space<vmem>>, vector<1x8x2x32xf32>,
    return
  }
  func.func @transform_0(%arg0: i32) -> (i32, i32) {
    %c0_i32 = arith.constant 0 : i32
    %c0_i32_0 = arith.constant 0 : i32
    return %arg0, %c0_i32 : i32, i32
  }
  func.func @transform_1(%arg0: i32) -> (i32, i32) {
    %c0_i32 = arith.constant 0 : i32
    %c0_i32_0 = arith.constant 0 : i32
    %c0_i32_1 = arith.constant 0 : i32
    return %c0_i32, %c0_i32_0 : i32, i32
  }
  func.func @transform_2(%arg0: i32) -> (i32, i32) {
    %c0_i32 = arith.constant 0 : i32
    %c0_i32_0 = arith.constant 0 : i32
    %c0_i32_1 = arith.constant 0 : i32
    return %c0_i32, %c0_i32_0 : i32, i32
  }
  func.func @transform_3(%arg0: i32) -> (i32, i32, i32) {
    %c0_i32 = arith.constant 0 : i32
    %c0_i32_0 = arith.constant 0 : i32
    %c0_i32_1 = arith.constant 0 : i32
    %c0_i32_2 = arith.constant 0 : i32
    return %c0_i32, %c0_i32_0, %c0_i32_1 : i32, i32, i32
  }
  func.func @transform_4(%arg0: i32) -> (i32, i32, i32) {
    %c0_i32 = arith.constant 0 : i32
    %c0_i32_0 = arith.constant 0 : i32
    %c0_i32_1 = arith.constant 0 : i32
    %c0_i32_2 = arith.constant 0 : i32
    return %c0_i32, %c0_i32_0, %c0_i32_1 : i32, i32, i32
  }
  func.func @transform_5(%arg0: i32) -> (i32, i32, i32) {
    %c0_i32 = arith.constant 0 : i32
    %c0_i32_0 = arith.constant 0 : i32
    %c0_i32_1 = arith.constant 0 : i32
    %c0_i32_2 = arith.constant 0 : i32
    return %c0_i32, %c0_i32_0, %c0_i32_1 : i32, i32, i32
  }
  func.func @transform_6(%arg0: i32) -> (i32, i32, i32) {
    %c0_i32 = arith.constant 0 : i32
    %c0_i32_0 = arith.constant 0 : i32
    %c0_i32_1 = arith.constant 0 : i32
    %c0_i32_2 = arith.constant 0 : i32
    return %c0_i32, %c0_i32_0, %c0_i32_1 : i32, i32, i32
  }
  func.func @transform_7(%arg0: i32) -> (i32, i32, i32, i32) {
    %c0_i32 = arith.constant 0 : i32
    %c0_i32_0 = arith.constant 0 : i32
    %c0_i32_1 = arith.constant 0 : i32
    %c0_i32_2 = arith.constant 0 : i32
    return %c0_i32, %arg0, %c0_i32_0, %c0_i32_1 : i32, i32, i32, i32
  }
  func.func @transform_8(%arg0: i32) -> (i32, i32, i32, i32) {
    %c0_i32 = arith.constant 0 : i32
    %c0_i32_0 = arith.constant 0 : i32
    %c0_i32_1 = arith.constant 0 : i32
    %c0_i32_2 = arith.constant 0 : i32
    return %c0_i32, %arg0, %c0_i32_0, %c0_i32_1 : i32, i32, i32, i32
  }
}

</mosaic_0001>

<bundles_post_ra>
// kernel: tpu_custom_call.1
= control target key start
LH: loop header
LB: loop body
LE: loop exit
PB: predicated region body
PF: predicated region fallthrough
CT: control target
= control target key end

     0   :  { %14 = vsyncpa [#allocation3], 0  ;;  %s1683_s0 = inlined_call_operand.hbm [shape: f32[16,16], index: 0, kind: input, shape index: {}]   ;;  %s1684_s1 = inlined_call_operand.hbm [shape: f32[16,32], index: 1, kind: input, shape index: {}]   ;;  %s1685_s2 = inlined_call_operand.vmem [shape: f32[1,32], index: 2, kind: input, shape index: {}]   ;;  %s1686_s3 = inlined_call_operand.hbm [shape: f32[3,32,32], index: 3, kind: input, shape index: {}]   ;;  %s1687_s4 = inlined_call_operand.hbm [shape: f32[3,32,32], index: 4, kind: input, shape index: {}]   ;;  %s1688_s5 = inlined_call_operand.vmem [shape: f32[3,1,32], index: 5, kind: input, shape index: {}]   ;;  %s1689_s6 = inlined_call_operand.vmem [shape: f32[3,1,32], index: 6, kind: input, shape index: {}]   ;;  %s1690_s7 = inlined_call_operand.hbm [shape: f32[3,8,2,32], index: 7, kind: output, shape index: {0}]   ;;  %s1691_s8 = inlined_call_operand.hbm [shape: f32[3,8,2,32], index: 8, kind: output, shape index: {1}]  }
   0x1   :  { %15 = vsyncpa [#allocation6], 0 }
   0x2   :  { %16 = vsyncpa [#allocation9], 0 }
   0x3   :  { %17 = vsyncpa [#allocation4], 0 }
   0x4   :  { %18 = vsyncpa [#allocation12], 0  ;;  %s1406_s27 = smov [#allocation5]   ;;  %s1407_s29 = smov [#allocation2]  }
   0x5   :  { %s36_s28 = sshll.u32 %s1406_s27, 4  ;;  %s24_s30 = sshll.u32 %s1407_s29, 4  ;;  %s37_s28 = int_to_ptr.vmem [resolvable:$true] %s36_s28  ;;  %s1462_s30 = int_to_ptr.vmem [resolvable:$true] %s24_s30 }
   0x6   :  { %s1264_s11 = scalar_lea.hbm %s1684_s1, 256 }
   0x7   :  { %p1265_p0 = scmp.ne.s32.totalorder %s1684_s1, %s1264_s11  ;;  %p1268_p1 = scmp.lt.u32.totalorder %s1264_s11, %s1684_s1 }
   0x9   :  { %p1270_p2 = pnand %p1268_p1, %p1265_p0 }
   0xb   :  { %1273 = shalt.err (!%p1270_p2)
}
   0xc   :  { %s1274_s16 = scalar_lea.vmem %s37_s28, 256  ;;  %p1279_p4 = scmp.lt.s32.totalorder %s37_s28, %s37_s28 }
   0xd   :  { %p1275_p3 = scmp.ne.s32.totalorder %s37_s28, %s1274_s16  ;;  %p1280_p5 = scmp.lt.s32.totalorder %s1274_s16, %s1274_s16 }
   0xf   :  { %p1281_p6 = por %p1280_p5, %p1279_p4 }
  0x11   :  { %p1282_p7 = pnand %p1281_p6, %p1275_p3 }
  0x13   :  { %1285 = shalt.err (!%p1282_p7)
}
  0x14   :  { %s1408_s17 = smov 128   ;;  %s1409_s18 = smov 8  }
  0x15   :  { %42 = dma.hbm_to_vmem [thread:$0]  %s1684_s1, 256, %s37_s28, [#allocation6], %s1408_s17, %s1408_s17, %s1409_s18  }
  0x16   :  { %s1286_s23 = scalar_lea.hbm %s1683_s0, 256 }
  0x17   :  { %p1287_p8 = scmp.ne.s32.totalorder %s1683_s0, %s1286_s23  ;;  %p1290_p9 = scmp.lt.u32.totalorder %s1286_s23, %s1683_s0 }
  0x19   :  { %p1292_p10 = pnand %p1290_p9, %p1287_p8 }
  0x1b   :  { %1295 = shalt.err (!%p1292_p10)
}
  0x1c   :  { %s1296_s29 = scalar_lea.vmem %s1462_s30, 256  ;;  %p1301_p12 = scmp.lt.s32.totalorder %s1462_s30, %s1462_s30 }
  0x1d   :  { %p1297_p11 = scmp.ne.s32.totalorder %s1462_s30, %s1296_s29  ;;  %p1302_p13 = scmp.lt.s32.totalorder %s1296_s29, %s1296_s29 }
  0x1f   :  { %p1303_p0 = por %p1302_p13, %p1301_p12 }
  0x21   :  { %p1304_p1 = pnand %p1303_p0, %p1297_p11 }
  0x23   :  { %1307 = shalt.err (!%p1304_p1)
}
  0x24   :  { %30 = dma.hbm_to_vmem [thread:$0]  %s1683_s0, 256, %s1462_s30, [#allocation3], %s1408_s17, %s1408_s17, %s1409_s18  }
  0x25   :  { %s1410_s9 = smov [#allocation7]   ;;  %s1411_s11 = smov [#allocation8]  }
  0x26   :  { %s50_s10 = sshll.u32 %s1410_s9, 4  ;;  %s62_s12 = sshll.u32 %s1411_s11, 4  ;;  %s51_s10 = int_to_ptr.vmem [resolvable:$true] %s50_s10  ;;  %s1499_s12 = int_to_ptr.vmem [resolvable:$true] %s62_s12 }
  0x27   :  { %s1308_s15 = scalar_lea.hbm %s1686_s3, 1536 }
  0x28   :  { %p1309_p2 = scmp.ne.s32.totalorder %s1686_s3, %s1308_s15  ;;  %p1312_p3 = scmp.lt.u32.totalorder %s1308_s15, %s1686_s3 }
  0x2a   :  { %p1314_p4 = pnand %p1312_p3, %p1309_p2 }
  0x2c   :  { %1317 = shalt.err (!%p1314_p4)
}
  0x2d   :  { %s1318_s0 = scalar_lea.vmem %s51_s10, 1536  ;;  %p1323_p6 = scmp.lt.s32.totalorder %s51_s10, %s51_s10 }
  0x2e   :  { %p1319_p5 = scmp.ne.s32.totalorder %s51_s10, %s1318_s0  ;;  %p1324_p7 = scmp.lt.s32.totalorder %s1318_s0, %s1318_s0 }
  0x30   :  { %p1325_p8 = por %p1324_p7, %p1323_p6 }
  0x32   :  { %p1326_p9 = pnand %p1325_p8, %p1319_p5 }
  0x34   :  { %1329 = shalt.err (!%p1326_p9)
}
  0x35   :  { %56 = dma.hbm_to_vmem [thread:$0]  %s1686_s3, 1536, %s51_s10, [#allocation6], %s1408_s17, %s1408_s17, %s1409_s18  }
  0x36   :  { %s1330_s25 = scalar_lea.hbm %s1687_s4, 1536 }
  0x37   :  { %p1331_p10 = scmp.ne.s32.totalorder %s1687_s4, %s1330_s25  ;;  %p1334_p11 = scmp.lt.u32.totalorder %s1330_s25, %s1687_s4 }
  0x39   :  { %p1336_p12 = pnand %p1334_p11, %p1331_p10 }
  0x3b   :  { %1339 = shalt.err (!%p1336_p12)
}
  0x3c   :  { %s1340_s28 = scalar_lea.vmem %s1499_s12, 1536  ;;  %p1345_p0 = scmp.lt.s32.totalorder %s1499_s12, %s1499_s12 }
  0x3d   :  { %p1341_p13 = scmp.ne.s32.totalorder %s1499_s12, %s1340_s28  ;;  %p1346_p1 = scmp.lt.s32.totalorder %s1340_s28, %s1340_s28 }
  0x3f   :  { %p1347_p2 = por %p1346_p1, %p1345_p0 }
  0x41   :  { %p1348_p3 = pnand %p1347_p2, %p1341_p13 }
  0x43   :  { %1351 = shalt.err (!%p1348_p3)
}
  0x44   :  { %68 = dma.hbm_to_vmem [thread:$0]  %s1687_s4, 1536, %s1499_s12, [#allocation9], %s1408_s17, %s1408_s17, %s1409_s18  }
  0x45   :  { %1396 = dma.done.wait [#allocation3], 256  }
  0x46   :  { %1397 = vsyncadd [#allocation3], 4294967040 }
  0x47   :  { %1398 = dma.done.wait [#allocation6], 1792  }
  0x48   :  { %1399 = vsyncadd [#allocation6], 4294965504 }
  0x49   :  { %1400 = dma.done.wait [#allocation9], 1536  }
  0x4a   :  { %1401 = vsyncadd [#allocation9], 4294965760  ;;  %vm96_vm0 = vcmask 130048   ;;  %v87_v0 = vld [vmem:[#allocation5] sm:$0xff]  ;;  %v88_v1 = vld [vmem:[#allocation5 + $0x8] sm:$0xff]  ;;  %vm191_vm1 = vcmask 261120   ;;  %v365_v50 = vlaneseq }
  0x4b   :  { %v85_v2 = vld [vmem:[#allocation2] sm:$0xff]  ;;  %v1201_v3 = vpack.c.bf16 %v88_v1, %v87_v0  ;;  %v181_v5 = vld [vmem:[#allocation7 + $0x8] sm:$0xff]  ;;  %v182_v11 = vld [vmem:[#allocation7 + $0x10] sm:$0xff]  ;;  %v1412_v48 = vmov 1983009808   ;;  %vm403_vm2 = vcmask 254976  }
  0x4c   :  { %1132 = vmatprep.mubr.msk.f32.mxu0 %vm96_vm0, %v85_v2  ;;  %v180_v4 = vld [vmem:[#allocation7] sm:$0xff]  ;;  %v274_v8 = vld [vmem:[#allocation8 + $0x8] sm:$0xff]  ;;  %v183_v12 = vld [vmem:[#allocation7 + $0x18] sm:$0xff]  ;;  %v363_v49 = vunpack.c.l.s4 %v1412_v48  ;;  %v366_v52 = vshrl.u32 %v365_v50, 7  ;;  %s1414_s0 = smov [#allocation11]  }
  0x4d   :  { %v1205_v6 = vpack.c.bf16 %v181_v5, %v180_v4  ;;  %v273_v7 = vld [vmem:[#allocation8] sm:$0xff]  ;;  %1202 = vmatprep.subr.bf16.mxu0 %v1201_v3  ;;  %v86_v10 = vld [vmem:[#allocation2 + $0x8] sm:$0xff]  ;;  %v275_v13 = vld [vmem:[#allocation8 + $0x10] sm:$0xff]  ;;  %v1209_v14 = vpack.c.bf16 %v183_v12, %v182_v11  ;;  %s1045_s30 = sshll.u32 %s1414_s0, 4  ;;  %s1644_s30 = int_to_ptr.vmem [resolvable:$true] %s1045_s30 }
  0x4e   :  { %v1213_v9 = vpack.c.bf16 %v274_v8, %v273_v7  ;;  %1204 = vmatpush3.bf16.msra.mxu0 %v1201_v3  ;;  %v276_v15 = vld [vmem:[#allocation8 + $0x18] sm:$0xff]  ;;  %v465_v17 = vld [vmem:[#allocation7 + $0x20] sm:$0xff]  ;;  %v466_v18 = vld [vmem:[#allocation7 + $0x28] sm:$0xff]  ;;  %v364_v51 = vunpack.c.0.s8 %v363_v49 }
  0x4f   :  { %1206 = vmatprep.subr.bf16.mxu1 %v1205_v6  ;;  %v1217_v16 = vpack.c.bf16 %v276_v15, %v275_v13  ;;  %v553_v19 = vld [vmem:[#allocation8 + $0x20] sm:$0xff]  ;;  %v1221_v20 = vpack.c.bf16 %v466_v18, %v465_v17  ;;  %v554_v21 = vld [vmem:[#allocation8 + $0x28] sm:$0xff]  ;;  %v467_v28 = vld [vmem:[#allocation7 + $0x30] sm:$0xff] }
  0x50   :  { %1214 = vmatprep.subr.bf16.mxu0 %v1213_v9  ;;  %1208 = vmatpush3.bf16.msra.mxu1 %v1205_v6  ;;  %v1229_v22 = vpack.c.bf16 %v554_v21, %v553_v19  ;;  %v1063_v23 = vld [vmem:[%s1685_s2] ss:$0 sm:$0xff]  ;;  %v468_v29 = vld [vmem:[#allocation7 + $0x38] sm:$0xff]  ;;  %v555_v30 = vld [vmem:[#allocation8 + $0x30] sm:$0xff]  ;;  %v1559_v55 = vsub.s32 %v364_v51, %v366_v52 }
  0x51   :  { %1133 = vmatmul.mubr.msk.f32.vlgmr.msra.gmra.mrb[0].mxu0 %vm96_vm0, %v86_v10  ;;  %1210 = vmatprep.subr.bf16.mxu1 %v1209_v14  ;;  %v556_v31 = vld [vmem:[#allocation8 + $0x38] sm:$0xff]  ;;  %v747_v34 = vld [vmem:[#allocation7 + $0x40] sm:$0xff]  ;;  %v1225_v35 = vpack.c.bf16 %v468_v29, %v467_v28  ;;  %v748_v37 = vld [vmem:[#allocation7 + $0x48] sm:$0xff] }
  0x52   :  { %1216 = vmatpush3.bf16.msra.mxu0 %v1213_v9  ;;  %v1233_v36 = vpack.c.bf16 %v556_v31, %v555_v30  ;;  %v835_v38 = vld [vmem:[#allocation8 + $0x40] sm:$0xff]  ;;  %v836_v39 = vld [vmem:[#allocation8 + $0x48] sm:$0xff]  ;;  %v1237_v40 = vpack.c.bf16 %v748_v37, %v747_v34  ;;  %v749_v42 = vld [vmem:[#allocation7 + $0x50] sm:$0xff] }
  0x53   :  { %1218 = vmatprep.subr.bf16.mxu0 %v1217_v16  ;;  %v1245_v41 = vpack.c.bf16 %v836_v39, %v835_v38  ;;  %v750_v43 = vld [vmem:[#allocation7 + $0x58] sm:$0xff]  ;;  %v837_v44 = vld [vmem:[#allocation8 + $0x50] sm:$0xff]  ;;  %v1066_v53 = vld [vmem:[%s1688_s5] ss:$0 sm:$0xff] }
  0x54   :  { %1212 = vmatpush3.bf16.msra.mxu1 %v1209_v14  ;;  %v838_v45 = vld [vmem:[#allocation8 + $0x58] sm:$0xff]  ;;  %v1241_v46 = vpack.c.bf16 %v750_v43, %v749_v42  ;;  %v1069_v54 = vld [vmem:[%s1689_s6] ss:$0 sm:$0xff]  ;;  %v1077_v17 = vld [vmem:[%s1689_s6 + $0x1] ss:$0 sm:$0xff] }
  0x55   :  { %1222 = vmatprep.subr.bf16.mxu1 %v1221_v20  ;;  %v1249_v47 = vpack.c.bf16 %v838_v45, %v837_v44  ;;  %v1085_v49 = vld [vmem:[%s1689_s6 + $0x2] ss:$0 sm:$0xff] }
  0x56   :  { %1220 = vmatpush3.bf16.msra.mxu0 %v1217_v16  ;;  %v1073_v16 = vld [vmem:[%s1688_s5 + $0x1] ss:$0 sm:$0xff] }
  0x57   :  { %1230 = vmatprep.subr.bf16.mxu0 %v1229_v22 }
 0x124   :  { %v1134_v24 = vpop.f32.mrb[0].mxu0 }
 0x125   :  { %v175_v25 = vadd.f32 %v1134_v24, %v1063_v23  ;;  %v169_v26 = vpop.f32.mrb[1].mxu0 }
 0x126   :  { %v170_v27 = vadd.f32 %v1063_v23, %v169_v26 }
 0x127   :  { %v179_v33 = vmax.f32 %v175_v25, 0.0 }
 0x128   :  { %v178_v32 = vmax.f32 %v170_v27, 0.0 }
 0x12a   :  { %1143 = vmatprep.mubr.msk.f32.mxu1 %vm191_vm1, %v178_v32  ;;  %1154 = vmatprep.mubr.msk.f32.mxu0 %vm191_vm1, %v178_v32 }
 0x12b   :  { %1144 = vmatmul.mubr.msk.f32.vlgmr.msra.gmra.mrb[0].mxu1 %vm191_vm1, %v179_v33  ;;  %1155 = vmatmul.mubr.msk.f32.vlgmr.msra.gmra.mrb[2].mxu0 %vm191_vm1, %v179_v33 }
 0x12c   :  { %1224 = vmatpush3.bf16.msra.mxu1 %v1221_v20  ;;  %1232 = vmatpush3.bf16.msra.mxu0 %v1229_v22 }
 0x12d   :  { %1165 = vmatprep.mubr.msk.f32.mxu1 %vm191_vm1, %v178_v32  ;;  %1176 = vmatprep.mubr.msk.f32.mxu0 %vm191_vm1, %v178_v32 }
 0x12e   :  { %1226 = vmatprep.subr.bf16.mxu1 %v1225_v35  ;;  %1234 = vmatprep.subr.bf16.mxu0 %v1233_v36 }
 0x130   :  { %1228 = vmatpush3.bf16.msra.mxu1 %v1225_v35  ;;  %1236 = vmatpush3.bf16.msra.mxu0 %v1233_v36 }
 0x131   :  { %1238 = vmatprep.subr.bf16.mxu1 %v1237_v40  ;;  %1246 = vmatprep.subr.bf16.mxu0 %v1245_v41 }
 0x133   :  { %1166 = vmatmul.mubr.msk.f32.vlgmr.msra.gmra.mrb[2].mxu1 %vm191_vm1, %v179_v33  ;;  %1177 = vmatmul.mubr.msk.f32.vlgmr.msra.gmra.mrb[4].mxu0 %vm191_vm1, %v179_v33 }
 0x134   :  { %1240 = vmatpush3.bf16.msra.mxu1 %v1237_v40  ;;  %1187 = vmatprep.mubr.msk.f32.mxu1 %vm191_vm1, %v178_v32 }
 0x135   :  { %1248 = vmatpush3.bf16.msra.mxu0 %v1245_v41  ;;  %1198 = vmatprep.mubr.msk.f32.mxu0 %vm191_vm1, %v178_v32 }
 0x136   :  { %1242 = vmatprep.subr.bf16.mxu1 %v1241_v46  ;;  %1250 = vmatprep.subr.bf16.mxu0 %v1249_v47 }
 0x138   :  { %1244 = vmatpush3.bf16.msra.mxu1 %v1241_v46  ;;  %v1081_v46 = vld [vmem:[%s1688_s5 + $0x2] ss:$0 sm:$0xff]  ;;  %s1413_s5 = smov [#allocation10]  }
 0x139   :  { %1252 = vmatpush3.bf16.msra.mxu0 %v1249_v47  ;;  %s1033_s6 = sshll.u32 %s1413_s5, 4  ;;  %s1635_s6 = int_to_ptr.vmem [resolvable:$true] %s1033_s6 }
 0x13a   :  { %s1352_s22 = scalar_lea.vmem %s1635_s6, 768  ;;  %p1357_p5 = scmp.lt.s32.totalorder %s1635_s6, %s1635_s6 }
 0x13b   :  { %1188 = vmatmul.mubr.msk.f32.vlgmr.msra.gmra.mrb[4].mxu1 %vm191_vm1, %v179_v33  ;;  %p1353_p4 = scmp.ne.s32.totalorder %s1635_s6, %s1352_s22  ;;  %p1358_p6 = scmp.lt.s32.totalorder %s1352_s22, %s1352_s22 }
 0x13c   :  { %1199 = vmatmul.mubr.msk.f32.vlgmr.msra.gmra.mrb[6].mxu0 %vm191_vm1, %v179_v33 }
 0x13d   :  { %p1359_p7 = por %p1358_p6, %p1357_p5 }
 0x13f   :  { %p1360_p8 = pnand %p1359_p7, %p1353_p4 }
 0x1fe   :  { %v1145_v56 = vpop.f32.mrb[0].mxu1  ;;  %v1156_v57 = vpop.f32.mrb[2].mxu0 }
 0x1ff   :  { %v270_v58 = vadd.f32 %v1145_v56, %v1066_v53  ;;  %v356_v59 = vadd.f32 %v1156_v57, %v1069_v54  ;;  %v264_v60 = vpop.f32.mrb[1].mxu1  ;;  %v350_v61 = vpop.f32.mrb[3].mxu0 }
 0x200   :  { %v265_v62 = vadd.f32 %v1066_v53, %v264_v60  ;;  %v351_v63 = vadd.f32 %v1069_v54, %v350_v61 }
 0x201   :  { %v378_v0 = vcombine.high %v270_v58, %v270_v58  ;;  %v385_v1 = vrot.slane %v270_v58, %v1559_v55  ;;  %v431_v2 = vcombine.high %v356_v59, %v356_v59  ;;  %v438_v3 = vrot.slane %v356_v59, %v1559_v55 }
 0x202   :  { %v361_v4 = vcombine.high %v265_v62, %v265_v62  ;;  %v368_v5 = vrot.slane %v265_v62, %v1559_v55  ;;  %v414_v6 = vcombine.high %v351_v63, %v351_v63  ;;  %v421_v7 = vrot.slane %v351_v63, %v1559_v55 }
 0x203   :  { %v392_v8 = vrot.slane %v378_v0, %v1559_v55  ;;  %v393_v9 = vcombine.high %v385_v1, %v385_v1  ;;  %408 = vst.msk [vmem:[#allocation10 + $0x8] sm:$0x3] %vm403_vm2, %v385_v1  ;;  %v445_v10 = vrot.slane %v431_v2, %v1559_v55  ;;  %v446_v11 = vcombine.high %v438_v3, %v438_v3 }
 0x204   :  { %460 = vst.msk [vmem:[#allocation11 + $0x8] sm:$0x3] %vm403_vm2, %v438_v3  ;;  %v375_v12 = vrot.slane %v361_v4, %v1559_v55  ;;  %v376_v13 = vcombine.high %v368_v5, %v368_v5  ;;  %404 = vst.msk [vmem:[#allocation10] sm:$0x3] %vm403_vm2, %v368_v5  ;;  %v428_v14 = vrot.slane %v414_v6, %v1559_v55 }
 0x205   :  { %v429_v15 = vcombine.high %v421_v7, %v421_v7  ;;  %456 = vst.msk [vmem:[#allocation11] sm:$0x3] %vm403_vm2, %v421_v7  ;;  %v394_v18 = vcombine.high %v392_v8, %v392_v8  ;;  %409 = vst.msk [vmem:[#allocation10 + $0xa] sm:$0x3] %vm403_vm2, %v393_v9  ;;  %v447_v19 = vcombine.high %v445_v10, %v445_v10 }
 0x206   :  { %410 = vst.msk [vmem:[#allocation10 + $0xc] sm:$0x3] %vm403_vm2, %v392_v8  ;;  %461 = vst.msk [vmem:[#allocation11 + $0xa] sm:$0x3] %vm403_vm2, %v446_v11  ;;  %v377_v20 = vcombine.high %v375_v12, %v375_v12  ;;  %v430_v21 = vcombine.high %v428_v14, %v428_v14  ;;  %v1167_v22 = vpop.f32.mrb[2].mxu1  ;;  %v1178_v23 = vpop.f32.mrb[4].mxu0 }
 0x207   :  { %462 = vst.msk [vmem:[#allocation11 + $0xc] sm:$0x3] %vm403_vm2, %v445_v10  ;;  %405 = vst.msk [vmem:[#allocation10 + $0x2] sm:$0x3] %vm403_vm2, %v376_v13  ;;  %v549_v24 = vadd.f32 %v1167_v22, %v1073_v16  ;;  %v637_v25 = vadd.f32 %v1178_v23, %v1077_v17  ;;  %v543_v26 = vpop.f32.mrb[3].mxu1  ;;  %v631_v27 = vpop.f32.mrb[5].mxu0 }
 0x208   :  { %406 = vst.msk [vmem:[#allocation10 + $0x4] sm:$0x3] %vm403_vm2, %v375_v12  ;;  %457 = vst.msk [vmem:[#allocation11 + $0x2] sm:$0x3] %vm403_vm2, %v429_v15  ;;  %v544_v28 = vadd.f32 %v1073_v16, %v543_v26  ;;  %v632_v29 = vadd.f32 %v1077_v17, %v631_v27 }
 0x209   :  { %458 = vst.msk [vmem:[#allocation11 + $0x4] sm:$0x3] %vm403_vm2, %v428_v14  ;;  %411 = vst.msk [vmem:[#allocation10 + $0xe] sm:$0x3] %vm403_vm2, %v394_v18  ;;  %v659_v30 = vcombine.high %v549_v24, %v549_v24  ;;  %v666_v31 = vrot.slane %v549_v24, %v1559_v55  ;;  %v712_v32 = vcombine.high %v637_v25, %v637_v25 }
 0x20a   :  { %463 = vst.msk [vmem:[#allocation11 + $0xe] sm:$0x3] %vm403_vm2, %v447_v19  ;;  %407 = vst.msk [vmem:[#allocation10 + $0x6] sm:$0x3] %vm403_vm2, %v377_v20  ;;  %v719_v33 = vrot.slane %v637_v25, %v1559_v55  ;;  %v642_v34 = vcombine.high %v544_v28, %v544_v28  ;;  %v649_v35 = vrot.slane %v544_v28, %v1559_v55 }
 0x20b   :  { %459 = vst.msk [vmem:[#allocation11 + $0x6] sm:$0x3] %vm403_vm2, %v430_v21  ;;  %v695_v36 = vcombine.high %v632_v29, %v632_v29  ;;  %v702_v37 = vrot.slane %v632_v29, %v1559_v55  ;;  %v673_v38 = vrot.slane %v659_v30, %v1559_v55  ;;  %v674_v39 = vcombine.high %v666_v31, %v666_v31 }
 0x20c   :  { %689 = vst.msk [vmem:[#allocation10 + $0x18] sm:$0x3] %vm403_vm2, %v666_v31  ;;  %v726_v40 = vrot.slane %v712_v32, %v1559_v55  ;;  %v727_v41 = vcombine.high %v719_v33, %v719_v33  ;;  %742 = vst.msk [vmem:[#allocation11 + $0x18] sm:$0x3] %vm403_vm2, %v719_v33  ;;  %v656_v42 = vrot.slane %v642_v34, %v1559_v55 }
 0x20d   :  { %v657_v43 = vcombine.high %v649_v35, %v649_v35  ;;  %685 = vst.msk [vmem:[#allocation10 + $0x10] sm:$0x3] %vm403_vm2, %v649_v35  ;;  %v709_v44 = vrot.slane %v695_v36, %v1559_v55  ;;  %v710_v45 = vcombine.high %v702_v37, %v702_v37  ;;  %738 = vst.msk [vmem:[#allocation11 + $0x10] sm:$0x3] %vm403_vm2, %v702_v37 }
 0x20e   :  { %v675_v47 = vcombine.high %v673_v38, %v673_v38  ;;  %690 = vst.msk [vmem:[#allocation10 + $0x1a] sm:$0x3] %vm403_vm2, %v674_v39  ;;  %691 = vst.msk [vmem:[#allocation10 + $0x1c] sm:$0x3] %vm403_vm2, %v673_v38  ;;  %v728_v48 = vcombine.high %v726_v40, %v726_v40  ;;  %v658_v50 = vcombine.high %v656_v42, %v656_v42  ;;  %v1189_v52 = vpop.f32.mrb[4].mxu1 }
 0x20f   :  { %743 = vst.msk [vmem:[#allocation11 + $0x1a] sm:$0x3] %vm403_vm2, %v727_v41  ;;  %744 = vst.msk [vmem:[#allocation11 + $0x1c] sm:$0x3] %vm403_vm2, %v726_v40  ;;  %v711_v51 = vcombine.high %v709_v44, %v709_v44  ;;  %v831_v53 = vadd.f32 %v1189_v52, %v1081_v46  ;;  %v1200_v54 = vpop.f32.mrb[6].mxu0  ;;  %v825_v56 = vpop.f32.mrb[5].mxu1 }
 0x210   :  { %686 = vst.msk [vmem:[#allocation10 + $0x12] sm:$0x3] %vm403_vm2, %v657_v43  ;;  %687 = vst.msk [vmem:[#allocation10 + $0x14] sm:$0x3] %vm403_vm2, %v656_v42  ;;  %v919_v57 = vadd.f32 %v1200_v54, %v1085_v49  ;;  %v826_v58 = vadd.f32 %v1081_v46, %v825_v56  ;;  %v913_v59 = vpop.f32.mrb[7].mxu0 }
 0x211   :  { %739 = vst.msk [vmem:[#allocation11 + $0x12] sm:$0x3] %vm403_vm2, %v710_v45  ;;  %740 = vst.msk [vmem:[#allocation11 + $0x14] sm:$0x3] %vm403_vm2, %v709_v44  ;;  %v941_v60 = vcombine.high %v831_v53, %v831_v53  ;;  %v948_v61 = vrot.slane %v831_v53, %v1559_v55  ;;  %v914_v62 = vadd.f32 %v1085_v49, %v913_v59 }
 0x212   :  { %692 = vst.msk [vmem:[#allocation10 + $0x1e] sm:$0x3] %vm403_vm2, %v675_v47  ;;  %745 = vst.msk [vmem:[#allocation11 + $0x1e] sm:$0x3] %vm403_vm2, %v728_v48  ;;  %v994_v63 = vcombine.high %v919_v57, %v919_v57  ;;  %v1001_v0 = vrot.slane %v919_v57, %v1559_v55  ;;  %v924_v1 = vcombine.high %v826_v58, %v826_v58 }
 0x213   :  { %688 = vst.msk [vmem:[#allocation10 + $0x16] sm:$0x3] %vm403_vm2, %v658_v50  ;;  %741 = vst.msk [vmem:[#allocation11 + $0x16] sm:$0x3] %vm403_vm2, %v711_v51  ;;  %v931_v2 = vrot.slane %v826_v58, %v1559_v55  ;;  %v955_v3 = vrot.slane %v941_v60, %v1559_v55  ;;  %v956_v4 = vcombine.high %v948_v61, %v948_v61 }
 0x214   :  { %971 = vst.msk [vmem:[#allocation10 + $0x28] sm:$0x3] %vm403_vm2, %v948_v61  ;;  %v977_v5 = vcombine.high %v914_v62, %v914_v62  ;;  %v984_v6 = vrot.slane %v914_v62, %v1559_v55  ;;  %v1008_v7 = vrot.slane %v994_v63, %v1559_v55  ;;  %v1009_v8 = vcombine.high %v1001_v0, %v1001_v0 }
 0x215   :  { %1024 = vst.msk [vmem:[#allocation11 + $0x28] sm:$0x3] %vm403_vm2, %v1001_v0  ;;  %v938_v9 = vrot.slane %v924_v1, %v1559_v55  ;;  %v939_v10 = vcombine.high %v931_v2, %v931_v2  ;;  %967 = vst.msk [vmem:[#allocation10 + $0x20] sm:$0x3] %vm403_vm2, %v931_v2  ;;  %v957_v11 = vcombine.high %v955_v3, %v955_v3 }
 0x216   :  { %972 = vst.msk [vmem:[#allocation10 + $0x2a] sm:$0x3] %vm403_vm2, %v956_v4  ;;  %973 = vst.msk [vmem:[#allocation10 + $0x2c] sm:$0x3] %vm403_vm2, %v955_v3  ;;  %v991_v12 = vrot.slane %v977_v5, %v1559_v55  ;;  %v992_v13 = vcombine.high %v984_v6, %v984_v6  ;;  %v1010_v14 = vcombine.high %v1008_v7, %v1008_v7 }
 0x217   :  { %1020 = vst.msk [vmem:[#allocation11 + $0x20] sm:$0x3] %vm403_vm2, %v984_v6  ;;  %1025 = vst.msk [vmem:[#allocation11 + $0x2a] sm:$0x3] %vm403_vm2, %v1009_v8  ;;  %v940_v15 = vcombine.high %v938_v9, %v938_v9 }
 0x218   :  { %1026 = vst.msk [vmem:[#allocation11 + $0x2c] sm:$0x3] %vm403_vm2, %v1008_v7  ;;  %968 = vst.msk [vmem:[#allocation10 + $0x22] sm:$0x3] %vm403_vm2, %v939_v10  ;;  %v993_v55 = vcombine.high %v991_v12, %v991_v12 }
 0x219   :  { %969 = vst.msk [vmem:[#allocation10 + $0x24] sm:$0x3] %vm403_vm2, %v938_v9  ;;  %974 = vst.msk [vmem:[#allocation10 + $0x2e] sm:$0x3] %vm403_vm2, %v957_v11 }
 0x21a   :  { %1021 = vst.msk [vmem:[#allocation11 + $0x22] sm:$0x3] %vm403_vm2, %v992_v13  ;;  %1022 = vst.msk [vmem:[#allocation11 + $0x24] sm:$0x3] %vm403_vm2, %v991_v12 }
 0x21b   :  { %1027 = vst.msk [vmem:[#allocation11 + $0x2e] sm:$0x3] %vm403_vm2, %v1010_v14  ;;  %970 = vst.msk [vmem:[#allocation10 + $0x26] sm:$0x3] %vm403_vm2, %v940_v15 }
 0x21c   :  { %1023 = vst.msk [vmem:[#allocation11 + $0x26] sm:$0x3] %vm403_vm2, %v993_v55 }
 0x21d   :  { %1363 = shalt.err (!%p1360_p8)
}
 0x21e   :  { %s1364_s25 = scalar_lea.hbm %s1690_s7, 768 }
 0x21f   :  { %p1365_p9 = scmp.ne.s32.totalorder %s1690_s7, %s1364_s25  ;;  %p1368_p10 = scmp.lt.u32.totalorder %s1364_s25, %s1690_s7 }
 0x221   :  { %p1370_p11 = pnand %p1368_p10, %p1365_p9 }
 0x223   :  { %1373 = shalt.err (!%p1370_p11)
}
 0x224   :  { %s1415_s28 = smov 32   ;;  %s1416_s3 = smov 2  }
 0x225   :  { %1039 = dma.vmem_to_hbm [thread:$0]  %s1635_s6, 768, %s1690_s7, [#allocation4], %s1415_s28, %s1415_s28, %s1416_s3  }
 0x226   :  { %s1374_s17 = scalar_lea.vmem %s1644_s30, 768  ;;  %p1379_p13 = scmp.lt.s32.totalorder %s1644_s30, %s1644_s30 }
 0x227   :  { %p1375_p12 = scmp.ne.s32.totalorder %s1644_s30, %s1374_s17  ;;  %p1380_p0 = scmp.lt.s32.totalorder %s1374_s17, %s1374_s17 }
 0x229   :  { %p1381_p1 = por %p1380_p0, %p1379_p13 }
 0x22b   :  { %p1382_p2 = pnand %p1381_p1, %p1375_p12 }
 0x22d   :  { %1385 = shalt.err (!%p1382_p2)
}
 0x22e   :  { %s1386_s10 = scalar_lea.hbm %s1691_s8, 768 }
 0x22f   :  { %p1387_p3 = scmp.ne.s32.totalorder %s1691_s8, %s1386_s10  ;;  %p1390_p4 = scmp.lt.u32.totalorder %s1386_s10, %s1691_s8 }
 0x231   :  { %p1392_p5 = pnand %p1390_p4, %p1387_p3 }
 0x233   :  { %1395 = shalt.err (!%p1392_p5)
}
 0x234   :  { %1051 = dma.vmem_to_hbm [thread:$0]  %s1644_s30, 768, %s1691_s8, [#allocation12], %s1415_s28, %s1415_s28, %s1416_s3  }
 0x235   :  { %1402 = dma.done.wait [#allocation4], 768  }
 0x236   :  { %1403 = vsyncadd [#allocation4], 4294966528 }
 0x237   :  { %1404 = dma.done.wait [#allocation12], 768  }
 0x238   :  { %1405 = vsyncadd [#allocation12], 4294966528 }
 0x239   :  { %1058 = vsyncpa [#allocation3], 1 }
 0x23a   :  { %1059 = vsyncpa [#allocation6], 1 }
 0x23b   :  { %1060 = vsyncpa [#allocation9], 1 }
 0x23c   :  { %1061 = vsyncpa [#allocation4], 1 }
 0x23d   :  { %1062 = vsyncpa [#allocation12], 1 }

</bundles_post_ra>
